<compile_context>
chip_gen: v6e
topology: v6e:2x2x1
jax: 0.10.0
libtpu: 0.0.40
codegen_flags: <defaults>
</compile_context>

<pallas_src>
import functools

import jax
import jax.numpy as jnp
from jax import lax
from jax.experimental import pallas as pl
from jax.experimental.pallas import tpu as pltpu


def _round_up(n, m):
    return (n + m - 1) // m * m


def _rbm_ohe_kernel(x_ref, wt_ref, out_ref, *, nh, nv, xmin, inv_dx):
    # x_ref: (1, TB) f32   wt_ref: (Naug_pad, Nv_pad) f32   out_ref: (1, TB) f32
    x = x_ref[...]                                               # (1, TB)
    tb = x.shape[1]
    n_aug_pad, nv_pad = wt_ref.shape

    # --- index: trunc-toward-zero (torch .long()) + clamp to [0, Nv-1] ------
    # Clip the float BEFORE the int cast so out-of-range x is well-defined.
    xf = (x - xmin) * inv_dx
    xf = jnp.clip(xf, 0.0, float(nv - 1))
    idx = xf.astype(jnp.int32)                                   # (1, TB)

    # --- transposed one-hot: vT[i, r] = 1 iff i == idx[r] -------------------
    row = lax.broadcasted_iota(jnp.int32, (nv_pad, tb), 0)       # (Nv_pad, TB)
    vT = (row == idx).astype(jnp.float32)                        # (Nv_pad, TB)

    # --- single MXU matmul: res[j, r] = wt[j, idx[r]] ------------------------
    # rows j <  nh : exponent_j = c_j + w[idx, j]   (c folded into wt)
    # row  j == nh : b[idx]
    # rows j >  nh : zero padding
    res = jnp.dot(wt_ref[...], vT, preferred_element_type=jnp.float32)  # (Naug_pad, TB)

    # prod(1 + exp(e)) == exp(sum(softplus(e)));  b[idx] rides along untouched.
    sp = jnp.maximum(res, 0.0) + jnp.log1p(jnp.exp(-jnp.abs(res)))
    aug = lax.broadcasted_iota(jnp.int32, (n_aug_pad, tb), 0)
    contrib = jnp.where(aug < nh, sp, res)                       # pad rows give 0
    logpsi = jnp.sum(contrib, axis=0, keepdims=True)             # (1, TB)
    out_ref[...] = jnp.exp(logpsi)


def prepare_rbm_params(b, c, w):
    """Build the augmented, transposed weight block once per parameter update.

    wT_aug[j, i] = w[i, j] + c[j]  for j < Nh
    wT_aug[Nh, i] = b[i]
    zero elsewhere (padded rows/cols never contribute: one-hot is zero there).
    """
    Nv, Nh = w.shape
    n_aug_pad = _round_up(Nh + 1, 8)
    nv_pad = _round_up(Nv, 8)
    wt = jnp.zeros((n_aug_pad, nv_pad), jnp.float32)
    wt = wt.at[:Nh, :Nv].set(w.astype(jnp.float32).T +
                             c.astype(jnp.float32)[:, None])
    wt = wt.at[Nh, :Nv].set(b.astype(jnp.float32))
    return wt


def wavefunction_rbm_ohe_prepared(x, wt_aug, *, nv, nh,
                                  xmin=-10.0, xmax=10.0, tile_b=1024):
    """x: (B,) f32; wt_aug: from prepare_rbm_params -> (B,) f32."""
    B = x.shape[0]
    dx = (float(xmax) - float(xmin)) / (nv - 1)
    n_aug_pad, nv_pad = wt_aug.shape

    # Batch tile: multiple of 128 lanes; small batches collapse to one tile.
    tb = min(_round_up(int(tile_b), 128), _round_up(B, 128))
    b_pad = _round_up(B, tb)
    grid_n = b_pad // tb

    x_row = jnp.pad(x.astype(jnp.float32), (0, b_pad - B)).reshape(1, b_pad)

    # VMEM footprint: double-buffered (1, tb) x/out tiles, resident weights,
    # one-hot + matmul/softplus temporaries.  A few MiB is ample headroom on
    # every generation (well under v7x's 32 MiB scoped default).
    est = (2 * 2 * tb * 4
           + 2 * n_aug_pad * nv_pad * 4
           + tb * (nv_pad + 3 * n_aug_pad) * 4)
    vmem_limit = int(min(16 * 1024 * 1024, max(4 * 1024 * 1024, 2 * est)))

    cost = pl.CostEstimate(
        flops=2 * b_pad * nv_pad * n_aug_pad,
        transcendentals=3 * b_pad * nh,
        bytes_accessed=2 * b_pad * 4 + n_aug_pad * nv_pad * 4)

    kernel = functools.partial(_rbm_ohe_kernel, nh=nh, nv=nv,
                               xmin=float(xmin), inv_dx=1.0 / dx)

    # Only shard across TensorCores (v7x) when there is enough grid work.
    sem = "parallel" if grid_n >= 8 else "arbitrary"

    out = pl.pallas_call(
        kernel,
        out_shape=jax.ShapeDtypeStruct((1, b_pad), jnp.float32),
        grid=(grid_n,),
        in_specs=[
            pl.BlockSpec((1, tb), lambda i: (0, i)),              # x: batch in lanes
            pl.BlockSpec((n_aug_pad, nv_pad), lambda i: (0, 0)),  # weights: resident
        ],
        out_specs=pl.BlockSpec((1, tb), lambda i: (0, i)),        # lane-dense store
        compiler_params=pltpu.CompilerParams(
            dimension_semantics=(sem,),
            vmem_limit_bytes=vmem_limit),
        cost_estimate=cost,
    )(x_row, wt_aug)
    return out[0, :B]


def wavefunction_rbm_ohe(x, b, c, w, *, xmin=-10.0, xmax=10.0, tile_b=1024):
    """Convenience wrapper; for repeated evaluation call prepare_rbm_params once."""
    wt_aug = prepare_rbm_params(b, c, w)
    return wavefunction_rbm_ohe_prepared(x, wt_aug, nv=b.shape[0], nh=c.shape[0],
                                         xmin=xmin, xmax=xmax, tile_b=tile_b)


def _reference(x, b, c, w, *, xmin=-10.0, xmax=10.0):
    """Pure-JAX reference mirroring the PyTorch forward exactly."""
    Nv = b.shape[0]
    dx = (xmax - xmin) / (Nv - 1)
    idx = jnp.clip(((x - xmin) / dx).astype(jnp.int32), 0, Nv - 1)
    v = jax.nn.one_hot(idx, Nv, dtype=jnp.float32)
    exponent = c + v @ w
    prod = jnp.prod(1.0 + jnp.exp(exponent), axis=1)
    return jnp.exp(v @ b) * prod


if __name__ == "__main__":
    # Module defaults Nv=50, Nh=10; B=300 is not a multiple of 128, so this
    # exercises the lane padding path (tb=384, grid=(1,)).
    Nv, Nh, B = 50, 10, 300
    key = jax.random.PRNGKey(0)
    kb, kc, kw, kx = jax.random.split(key, 4)

    b = jax.random.normal(kb, (Nv,), dtype=jnp.float32)
    c = jax.random.normal(kc, (Nh,), dtype=jnp.float32)
    w = jax.random.normal(kw, (Nv, Nh), dtype=jnp.float32)
    x = jax.random.uniform(kx, (B,), dtype=jnp.float32, minval=-10.0, maxval=10.0)

    # Prepare parameters once (hoisted out of the per-call path), then forward.
    wt_aug = jax.block_until_ready(prepare_rbm_params(b, c, w))
    out = wavefunction_rbm_ohe_prepared(x, wt_aug, nv=Nv, nh=Nh)
    out = jax.block_until_ready(out)

    ref = _reference(x, b, c, w)
    assert out.shape == (B,)
    assert jnp.allclose(out, ref, rtol=2e-5, atol=1e-5), (
        float(jnp.max(jnp.abs(out - ref) / jnp.maximum(jnp.abs(ref), 1e-6))))

    print("KERNEL_OK")
</pallas_src>

<mosaic_0001>
module attributes {stable_mosaic.version = 11 : i64} {
  func.func @_rbm_ohe_kernel(%arg0: i32, %arg1: memref<1x384xf32, #tpu.memory_space<vmem>>, %arg2: memref<16x56xf32, #tpu.memory_space<vmem>>, %arg3: memref<1x384xf32, #tpu.memory_space<vmem>>) attributes {dimension_semantics = [#tpu.dimension_semantics<arbitrary>], iteration_bounds = array<i64: 1>, scalar_prefetch = 0 : i64, scratch_operands = 0 : i64, tpu.core_type = #tpu.core_type<tc>, window_params = [{transform_indices = @transform_0, window_bounds = array<i64: 1, 384>}, {pipeline_mode = #tpu.pipeline_mode<synchronous>, transform_indices = @transform_1, window_bounds = array<i64: 16, 56>}, {transform_indices = @transform_2, window_bounds = array<i64: 1, 384>}]} {
    %c0 = arith.constant 0 : index
    %c0_0 = arith.constant 0 : index
    %0 = vector.load %arg1[%c0, %c0_0] : memref<1x384xf32, #tpu.memory_space<vmem>>, vector<1x384xf32>
    %cst = arith.constant -1.000000e+01 : f32
    %1 = vector.broadcast %cst : f32 to vector<1x384xf32>
    %2 = arith.subf %0, %1 : vector<1x384xf32>
    %cst_1 = arith.constant 2.450000e+00 : f32
    %3 = vector.broadcast %cst_1 : f32 to vector<1x384xf32>
    %4 = arith.mulf %2, %3 : vector<1x384xf32>
    %cst_2 = arith.constant 0.000000e+00 : f32
    %cst_3 = arith.constant 4.900000e+01 : f32
    %5 = vector.broadcast %cst_2 : f32 to vector<1x384xf32>
    %6 = arith.maximumf %5, %4 : vector<1x384xf32>
    %7 = vector.broadcast %cst_3 : f32 to vector<1x384xf32>
    %8 = arith.minimumf %7, %6 : vector<1x384xf32>
    %9 = arith.fptosi %8 : vector<1x384xf32> to vector<1x384xi32>
    %10 = tpu.iota {dimensions = array<i32: 0>} : vector<56x384xi32>
    %11 = vector.broadcast %9 : vector<1x384xi32> to vector<56x384xi32>
    %12 = arith.cmpi eq, %10, %11 : vector<56x384xi32>
    %13 = arith.extui %12 : vector<56x384xi1> to vector<56x384xi32>
    %14 = arith.sitofp %13 : vector<56x384xi32> to vector<56x384xf32>
    %c0_4 = arith.constant 0 : index
    %c0_5 = arith.constant 0 : index
    %15 = vector.load %arg2[%c0_4, %c0_5] : memref<16x56xf32, #tpu.memory_space<vmem>>, vector<16x56xf32>
    %cst_6 = arith.constant dense<0.000000e+00> : vector<16x384xf32>
    %16 = tpu.matmul %15, %14, %cst_6 {dimension_numbers = #tpu.dot_dimension_numbers<[1], [0], [0], [1], [0, 0, 1, 1], [], []>} : vector<16x56xf32>, vector<56x384xf32>, vector<16x384xf32> -> vector<16x384xf32>
    %cst_7 = arith.constant 0.000000e+00 : f32
    %17 = vector.broadcast %cst_7 : f32 to vector<16x384xf32>
    %18 = arith.maximumf %16, %17 : vector<16x384xf32>
    %19 = math.absf %16 : vector<16x384xf32>
    %cst_8 = arith.constant 0.000000e+00 : f32
    %20 = vector.broadcast %cst_8 : f32 to vector<16x384xf32>
    %21 = arith.subf %20, %19 : vector<16x384xf32>
    %22 = math.exp %21 : vector<16x384xf32>
    %23 = math.log1p %22 : vector<16x384xf32>
    %24 = arith.addf %18, %23 : vector<16x384xf32>
    %25 = tpu.iota {dimensions = array<i32: 0>} : vector<16x384xi32>
    %c10_i32 = arith.constant 10 : i32
    %26 = vector.broadcast %c10_i32 : i32 to vector<16x384xi32>
    %27 = arith.cmpi slt, %25, %26 : vector<16x384xi32>
    %28 = arith.select %27, %24, %16 : vector<16x384xi1>, vector<16x384xf32>
    %cst_9 = arith.constant dense<0.000000e+00> : vector<384xf32>
    %29 = vector.multi_reduction <add>, %28, %cst_9 [0] : vector<16x384xf32> to vector<384xf32>
    %30 = vector.shape_cast %29 : vector<384xf32> to vector<1x384xf32>
    %31 = math.exp %30 : vector<1x384xf32>
    %c0_10 = arith.constant 0 : index
    %c0_11 = arith.constant 0 : index
    %32 = vector.load %arg3[%c0_10, %c0_11] : memref<1x384xf32, #tpu.memory_space<vmem>>, vector<1x384xf32>
    tpu.vector_store %arg3[%c0_10, %c0_11], %31 {strides = array<i32>} : memref<1x384xf32, #tpu.memory_space<vmem>>, vector<1x384xf32>,
    return
  }
  func.func @transform_0(%arg0: i32) -> (i32, i32) {
    %c0_i32 = arith.constant 0 : i32
    %c0_i32_0 = arith.constant 0 : i32
    return %c0_i32, %arg0 : i32, i32
  }
  func.func @transform_1(%arg0: i32) -> (i32, i32) {
    %c0_i32 = arith.constant 0 : i32
    %c0_i32_0 = arith.constant 0 : i32
    %c0_i32_1 = arith.constant 0 : i32
    return %c0_i32, %c0_i32_0 : i32, i32
  }
  func.func @transform_2(%arg0: i32) -> (i32, i32) {
    %c0_i32 = arith.constant 0 : i32
    %c0_i32_0 = arith.constant 0 : i32
    return %c0_i32, %arg0 : i32, i32
  }
}

</mosaic_0001>

<bundles_post_ra>
// kernel: tpu_custom_call.1
= control target key start
LH: loop header
LB: loop body
LE: loop exit
PB: predicated region body
PF: predicated region fallthrough
CT: control target
= control target key end

     0   :  { %7 = vsyncpa [#allocation3], 0  ;;  %s756_s0 = inlined_call_operand.hbm [shape: f32[1,384], index: 0, kind: input, shape index: {}]   ;;  %s757_s1 = inlined_call_operand.hbm [shape: f32[16,56], index: 1, kind: input, shape index: {}]   ;;  %s758_s2 = inlined_call_operand.hbm [shape: f32[1,384], index: 2, kind: output, shape index: {}]  }
   0x1   :  { %8 = vsyncpa [#allocation6], 0 }
   0x2   :  { %9 = vsyncpa [#allocation4], 0  ;;  %s640_s9 = smov [#allocation2]   ;;  %s641_s11 = smov [#allocation5]  }
   0x3   :  { %s16_s10 = sshll.u32 %s640_s9, 4  ;;  %s25_s12 = sshll.u32 %s641_s11, 4  ;;  %s17_s10 = int_to_ptr.vmem [resolvable:$true] %s16_s10  ;;  %s26_s12 = int_to_ptr.vmem [resolvable:$true] %s25_s12 }
   0x4   :  { %s582_s13 = scalar_lea.vmem %s17_s10, 48  ;;  %s586_s14 = scalar_lea.vmem %s17_s10, 64 }
   0x5   :  { %p583_p0 = scmp.ne.s32.totalorder %s17_s10, %s582_s13  ;;  %p587_p1 = scmp.lt.s32.totalorder %s17_s10, %s17_s10 }
   0x6   :  { %p588_p2 = scmp.lt.s32.totalorder %s586_s14, %s582_s13 }
   0x8   :  { %p589_p3 = por %p588_p2, %p587_p1 }
   0xa   :  { %p590_p4 = pnand %p589_p3, %p583_p0 }
   0xc   :  { %593 = shalt.err (!%p590_p4)
}
   0xd   :  { %19 = dma.hbm_to_vmem [thread:$0]  %s756_s0, 48, %s17_s10, [#allocation3]  }
   0xe   :  { %s602_s17 = scalar_lea.vmem %s26_s12, 256  ;;  %p607_p6 = scmp.lt.s32.totalorder %s26_s12, %s26_s12 }
   0xf   :  { %p603_p5 = scmp.ne.s32.totalorder %s26_s12, %s602_s17  ;;  %p608_p7 = scmp.lt.s32.totalorder %s602_s17, %s602_s17 }
  0x11   :  { %p609_p8 = por %p608_p7, %p607_p6 }
  0x13   :  { %p610_p9 = pnand %p609_p8, %p603_p5 }
  0x15   :  { %613 = shalt.err (!%p610_p9)
}
  0x16   :  { %s642_s18 = smov 128   ;;  %s643_s19 = smov 8  }
  0x17   :  { %31 = dma.hbm_to_vmem [thread:$0]  %s757_s1, 256, %s26_s12, [#allocation6], %s642_s18, %s642_s18, %s643_s19  }
  0x18   :  { %634 = dma.done.wait [#allocation3], 48  }
  0x19   :  { %635 = vsyncadd [#allocation3], 4294967248 }
  0x1a   :  { %636 = dma.done.wait [#allocation6], 256  }
  0x1b   :  { %637 = vsyncadd [#allocation6], 4294967040  ;;  %v644_v0 = vmov 0.0   ;;  %vm129_vm0 = vcmask 457728   ;;  %v38_v1 = vld [vmem:[#allocation2] sm:$0x7]  ;;  %v44_v4 = vlaneseq }
  0x1c   :  { %200 = vmatprep.mubr.f32.mxu0 %v644_v0  ;;  %v670_v2 = vld [vmem:[#allocation5] sm:$0xff]  ;;  %v461_v3 = vadd.f32 10.0, %v38_v1  ;;  %v645_v21 = vmov 1.0   ;;  %v128_v24 = vld [vmem:[#allocation5 + $0x8] sm:$0xff]  ;;  %s647_s0 = smov [#allocation7]  }
  0x1d   :  { %531 = vmatprep.mubr.msk.f32.mxu1 %vm129_vm0, %v670_v2  ;;  %v675_v7 = vshrl.u32 %v44_v4, 7  ;;  %s451_s1 = sshll.u32 %s647_s0, 4  ;;  %s452_s1 = int_to_ptr.vmem [resolvable:$true] %s451_s1 }
  0x1e   :  { %v40_v5 = vmul.f32 2.45, %v461_v3  ;;  %s614_s22 = scalar_lea.vmem %s452_s1, 48  ;;  %s618_s23 = scalar_lea.vmem %s452_s1, 64 }
  0x1f   :  { %v58_v10 = vsub.s32 1, %v675_v7  ;;  %v62_v11 = vsub.s32 2, %v675_v7  ;;  %v54_v12 = vsub.s32 0, %v675_v7  ;;  %v51_v14 = vadd.s32 48, %v675_v7  ;;  %p615_p10 = scmp.ne.s32.totalorder %s452_s1, %s614_s22  ;;  %p619_p11 = scmp.lt.s32.totalorder %s452_s1, %s452_s1 }
  0x20   :  { %v41_v6 = vmax.f32 %v40_v5, 0.0  ;;  %v50_v15 = vadd.s32 40, %v675_v7  ;;  %v49_v19 = vadd.s32 32, %v675_v7  ;;  %v48_v20 = vadd.s32 24, %v675_v7  ;;  %p620_p12 = scmp.lt.s32.totalorder %s618_s23, %s614_s22 }
  0x21   :  { %v47_v22 = vadd.s32 16, %v675_v7  ;;  %v686_v23 = vadd.s32 8, %v675_v7 }
  0x22   :  { %v42_v8 = vmin.f32 %v41_v6, 49.0  ;;  %p621_p13 = por %p620_p12, %p619_p11 }
  0x24   :  { %v534_v9 = vtrunc.f32 %v42_v8  ;;  %p622_p0 = pnand %p621_p13, %p615_p10 }
  0x26   :  { %v535_v13 = vcvt.f32.s32 %v534_v9 }
  0x28   :  { %v59_v16 = vrot.slane %v535_v13, %v58_v10  ;;  %v63_v17 = vrot.slane %v535_v13, %v62_v11  ;;  %v55_v18 = vrot.slane %v535_v13, %v54_v12 }
  0x2a   :  { %vm83_vm1 = vcmp.eq.s32.totalorder %v51_v14, %v59_v16  ;;  %vm84_vm2 = vcmp.eq.s32.totalorder %v51_v14, %v63_v17  ;;  %vm82_vm3 = vcmp.eq.s32.totalorder %v51_v14, %v55_v18  ;;  %vm80_vm4 = vcmp.eq.s32.totalorder %v50_v15, %v59_v16 }
  0x2b   :  { %483 = vmatprep.subr.msk.mxu0 %vm83_vm1, %v645_v21  ;;  %517 = vmatprep.subr.msk.mxu1 %vm84_vm2, %v645_v21  ;;  %vm81_vm5 = vcmp.eq.s32.totalorder %v50_v15, %v63_v17  ;;  %vm79_vm6 = vcmp.eq.s32.totalorder %v50_v15, %v55_v18  ;;  %vm77_vm7 = vcmp.eq.s32.totalorder %v49_v19, %v59_v16 }
  0x2c   :  { %484 = vmatpush1.msk.msra.mxu0 %vm82_vm3, %v645_v21  ;;  %518 = vmatpush3.msk.msra.mxu1 %vm84_vm2, %v645_v21  ;;  %vm78_vm8 = vcmp.eq.s32.totalorder %v49_v19, %v63_v17  ;;  %vm76_vm9 = vcmp.eq.s32.totalorder %v49_v19, %v55_v18  ;;  %vm74_vm10 = vcmp.eq.s32.totalorder %v48_v20, %v59_v16 }
  0x2d   :  { %485 = vmatprep.subr.msk.mxu0 %vm80_vm4, %v645_v21  ;;  %519 = vmatprep.subr.msk.mxu1 %vm81_vm5, %v645_v21  ;;  %vm75_vm11 = vcmp.eq.s32.totalorder %v48_v20, %v63_v17  ;;  %vm73_vm12 = vcmp.eq.s32.totalorder %v48_v20, %v55_v18  ;;  %vm71_vm13 = vcmp.eq.s32.totalorder %v47_v22, %v59_v16 }
  0x2e   :  { %486 = vmatpush1.msk.msra.mxu0 %vm79_vm6, %v645_v21  ;;  %520 = vmatpush3.msk.msra.mxu1 %vm81_vm5, %v645_v21  ;;  %vm72_vm14 = vcmp.eq.s32.totalorder %v47_v22, %v63_v17  ;;  %vm70_vm15 = vcmp.eq.s32.totalorder %v47_v22, %v55_v18  ;;  %vm68_vm1 = vcmp.eq.s32.totalorder %v686_v23, %v59_v16 }
  0x2f   :  { %487 = vmatprep.subr.msk.mxu0 %vm77_vm7, %v645_v21  ;;  %521 = vmatprep.subr.msk.mxu1 %vm78_vm8, %v645_v21  ;;  %vm69_vm2 = vcmp.eq.s32.totalorder %v686_v23, %v63_v17  ;;  %vm67_vm3 = vcmp.eq.s32.totalorder %v686_v23, %v55_v18  ;;  %vm65_vm4 = vcmp.eq.s32.totalorder %v675_v7, %v59_v16 }
  0x30   :  { %488 = vmatpush1.msk.msra.mxu0 %vm76_vm9, %v645_v21  ;;  %522 = vmatpush3.msk.msra.mxu1 %vm78_vm8, %v645_v21  ;;  %vm66_vm5 = vcmp.eq.s32.totalorder %v675_v7, %v63_v17  ;;  %vm64_vm6 = vcmp.eq.s32.totalorder %v675_v7, %v55_v18 }
  0x31   :  { %489 = vmatprep.subr.msk.mxu0 %vm74_vm10, %v645_v21  ;;  %523 = vmatprep.subr.msk.mxu1 %vm75_vm11, %v645_v21 }
  0x32   :  { %490 = vmatpush1.msk.msra.mxu0 %vm73_vm12, %v645_v21  ;;  %524 = vmatpush3.msk.msra.mxu1 %vm75_vm11, %v645_v21 }
  0x33   :  { %491 = vmatprep.subr.msk.mxu0 %vm71_vm13, %v645_v21  ;;  %525 = vmatprep.subr.msk.mxu1 %vm72_vm14, %v645_v21  ;;  %vm442_vm13 = vcmp.lt.s32.totalorder %v44_v4, 384 }
  0x34   :  { %492 = vmatpush1.msk.msra.mxu0 %vm70_vm15, %v645_v21  ;;  %526 = vmatpush3.msk.msra.mxu1 %vm72_vm14, %v645_v21 }
  0x35   :  { %493 = vmatprep.subr.msk.mxu0 %vm68_vm1, %v645_v21  ;;  %527 = vmatprep.subr.msk.mxu1 %vm69_vm2, %v645_v21 }
  0x36   :  { %494 = vmatpush1.msk.msra.mxu0 %vm67_vm3, %v645_v21  ;;  %528 = vmatpush3.msk.msra.mxu1 %vm69_vm2, %v645_v21 }
  0x37   :  { %495 = vmatprep.subr.msk.mxu0 %vm65_vm4, %v645_v21  ;;  %529 = vmatprep.subr.msk.mxu1 %vm66_vm5, %v645_v21 }
  0x38   :  { %496 = vmatpush1.msk.msra.mxu0 %vm64_vm6, %v645_v21  ;;  %530 = vmatpush3.msk.msra.mxu1 %vm66_vm5, %v645_v21 }
  0x39   :  { %497 = vmatmul.mubr.msk.f32.vlgmr.msra.gmra.mxu0 %vm129_vm0, %v670_v2  ;;  %532 = vmatmul.mubr.msk.f32.vlgmr.msra.gmra.mxu1 %vm129_vm0, %v128_v24 }
  0x3a   :  { %206 = vmatprep.mubr.f32.mxu0 %v644_v0 }
  0x3d   :  { %498 = vmatmul.mubr.msk.f32.gmra.mxu0 %vm129_vm0, %v128_v24  ;;  %vm379_vm0 = vcmp.lt.s32.totalorder %v686_v23, 10 }
  0xf9   :  { %v699_v25 = vpop.f32.mrf.mxu0  ;;  %v701_v26 = vpop.f32.mrf.mxu1 }
  0xfa   :  { %v294_v27 = vand.u32 2147483647, %v699_v25  ;;  %v299_v28 = vand.u32 2147483647, %v701_v26  ;;  %v288_v6 = vmax.f32 %v699_v25, 0.0  ;;  %v293_v8 = vmax.f32 %v701_v26, 0.0 }
  0xfb   :  { %v705_v29 = vpop.f32.mrf.mxu0  ;;  %v707_v30 = vpop.f32.mrf.mxu1 }
  0xfc   :  { %v300_v31 = vsub.f32 0.0, %v294_v27  ;;  %v305_v32 = vsub.f32 0.0, %v299_v28  ;;  %v295_v33 = vand.u32 2147483647, %v705_v29  ;;  %v296_v34 = vand.u32 2147483647, %v707_v30 }
  0xfd   :  { %v711_v35 = vpop.f32.mrf.mxu0  ;;  %v290_v10 = vmax.f32 %v707_v30, 0.0 }
  0xfe   :  { %v306_v36 = vmul.f32 1.442695, %v300_v31  ;;  %v316_v37 = vmul.f32 1.442695, %v305_v32  ;;  %v301_v38 = vsub.f32 0.0, %v295_v33  ;;  %v302_v39 = vsub.f32 0.0, %v296_v34 }
  0xff   :  { %v297_v40 = vand.u32 2147483647, %v711_v35  ;;  %v714_v41 = vpop.f32.mrf.mxu0  ;;  %v291_v14 = vmax.f32 %v711_v35, 0.0 }
 0x100   :  { %544 = vpow2.f32 %v306_v36  ;;  %v308_v42 = vmul.f32 1.442695, %v301_v38  ;;  %v298_v43 = vand.u32 2147483647, %v714_v41  ;;  %v310_v44 = vmul.f32 1.442695, %v302_v39 }
 0x101   :  { %546 = vpow2.f32 %v316_v37  ;;  %v303_v45 = vsub.f32 0.0, %v297_v40  ;;  %v292_v24 = vmax.f32 %v714_v41, 0.0 }
 0x102   :  { %548 = vpow2.f32 %v308_v42  ;;  %v304_v46 = vsub.f32 0.0, %v298_v43 }
 0x103   :  { %550 = vpow2.f32 %v310_v44  ;;  %v312_v47 = vmul.f32 1.442695, %v303_v45 }
 0x104   :  { %v314_v48 = vmul.f32 1.442695, %v304_v46 }
 0x105   :  { %552 = vpow2.f32 %v312_v47 }
 0x106   :  { %554 = vpow2.f32 %v314_v48 }
 0x10d   :  { %v545_v49 = vpop.eup %544 }
 0x10e   :  { %v547_v50 = vpop.eup %546  ;;  %v318_v51 = vadd.f32 1.0, %v545_v49  ;;  %v321_v62 = vmul.f32 -0.5, %v545_v49  ;;  %v324_v0 = vand.u32 2147483647, %v545_v49 }
 0x10f   :  { %v717_v52 = vpop.eup %548  ;;  %v363_v53 = vadd.f32 1.0, %v547_v50  ;;  %v366_v61 = vmul.f32 -0.5, %v547_v50  ;;  %v369_v2 = vand.u32 2147483647, %v547_v50 }
 0x110   :  { %v551_v54 = vpop.eup %550  ;;  %556 = vlog2.f32 %v318_v51  ;;  %v327_v55 = vadd.f32 1.0, %v717_v52  ;;  %v330_v9 = vmul.f32 -0.5, %v717_v52  ;;  %v322_v12 = vadd.f32 1.0, %v321_v62 }
 0x111   :  { %558 = vlog2.f32 %v363_v53  ;;  %v336_v57 = vadd.f32 1.0, %v551_v54  ;;  %v339_v63 = vmul.f32 -0.5, %v551_v54  ;;  %v367_v1 = vadd.f32 1.0, %v366_v61 }
 0x112   :  { %v553_v56 = vpop.eup %552  ;;  %560 = vlog2.f32 %v327_v55  ;;  %vm730_vm7 = vcmp.lt.f32.partialorder %v324_v0, 0.0004427343  ;;  %v342_v19 = vand.u32 2147483647, %v551_v54  ;;  %vm370_vm8 = vcmp.lt.f32.partialorder %v369_v2, 0.0004427343 }
 0x113   :  { %v720_v58 = vpop.eup %554  ;;  %562 = vlog2.f32 %v336_v57  ;;  %v345_v59 = vadd.f32 1.0, %v553_v56  ;;  %v348_v3 = vmul.f32 -0.5, %v553_v56  ;;  %v340_v13 = vadd.f32 1.0, %v339_v63 }
 0x114   :  { %v354_v60 = vadd.f32 1.0, %v720_v58  ;;  %v357_v15 = vmul.f32 -0.5, %v720_v58  ;;  %v368_v18 = vmul.f32 %v547_v50, %v367_v1  ;;  %v333_v21 = vand.u32 2147483647, %v717_v52 }
 0x115   :  { %564 = vlog2.f32 %v345_v59  ;;  %v349_v22 = vadd.f32 1.0, %v348_v3  ;;  %v331_v30 = vadd.f32 1.0, %v330_v9  ;;  %v351_v31 = vand.u32 2147483647, %v553_v56 }
 0x116   :  { %566 = vlog2.f32 %v354_v60  ;;  %v341_v34 = vmul.f32 %v551_v54, %v340_v13  ;;  %v358_v36 = vadd.f32 1.0, %v357_v15  ;;  %v323_v38 = vmul.f32 %v545_v49, %v322_v12 }
 0x117   :  { %vm343_vm9 = vcmp.lt.f32.partialorder %v342_v19, 0.0004427343  ;;  %v360_v40 = vand.u32 2147483647, %v720_v58  ;;  %v350_v45 = vmul.f32 %v553_v56, %v349_v22  ;;  %v332_v48 = vmul.f32 %v717_v52, %v331_v30 }
 0x118   :  { %vm352_vm10 = vcmp.lt.f32.partialorder %v351_v31, 0.0004427343  ;;  %vm334_vm11 = vcmp.lt.f32.partialorder %v333_v21, 0.0004427343  ;;  %v359_v53 = vmul.f32 %v720_v58, %v358_v36  ;;  %v289_v56 = vmax.f32 %v705_v29, 0.0 }
 0x119   :  { %vm361_vm12 = vcmp.lt.f32.partialorder %v360_v40, 0.0004427343  ;;  %v646_v19 = vmov 1966171168  }
 0x11d   :  { %v557_v5 = vpop.eup %556 }
 0x11e   :  { %v559_v11 = vpop.eup %558  ;;  %v320_v27 = vmul.f32 0.6931472, %v557_v5 }
 0x11f   :  { %v365_v17 = vmul.f32 0.6931472, %v559_v11  ;;  %v561_v20 = vpop.eup %560 }
 0x120   :  { %v563_v25 = vpop.eup %562  ;;  %v329_v39 = vmul.f32 0.6931472, %v561_v20  ;;  %v326_v47 = vsel %vm730_vm7, %v323_v38, %v320_v27  ;;  %v418_v20 = vunpack.c.l.s4 %v646_v19 }
 0x121   :  { %v371_v28 = vsel %vm370_vm8, %v368_v18, %v365_v17  ;;  %v338_v33 = vmul.f32 0.6931472, %v563_v25 }
 0x122   :  { %v377_v32 = vadd.f32 %v371_v28, %v293_v8  ;;  %v565_v37 = vpop.eup %564  ;;  %v335_v54 = vsel %vm334_vm11, %v332_v48, %v329_v39  ;;  %v419_v21 = vunpack.c.0.s8 %v418_v20 }
 0x123   :  { %v344_v43 = vsel %vm343_vm9, %v341_v34, %v338_v33  ;;  %v347_v44 = vmul.f32 0.6931472, %v565_v37  ;;  %v567_v46 = vpop.eup %566  ;;  %v373_v62 = vadd.f32 %v335_v54, %v289_v56 }
 0x124   :  { %v385_v42 = vsel %vm379_vm0, %v377_v32, %v701_v26  ;;  %v374_v50 = vadd.f32 %v344_v43, %v290_v10  ;;  %v356_v51 = vmul.f32 0.6931472, %v567_v46  ;;  %v372_v26 = vadd.f32 %v326_v47, %v288_v6 }
 0x125   :  { %v353_v49 = vsel %vm352_vm10, %v350_v45, %v347_v44  ;;  %v422_v25 = vsub.s32 %v419_v21, %v675_v7 }
 0x126   :  { %v400_v55 = vadd.f32 %v385_v42, %v374_v50  ;;  %v375_v57 = vadd.f32 %v353_v49, %v291_v14  ;;  %v362_v59 = vsel %vm361_vm12, %v359_v53, %v356_v51 }
 0x127   :  { %v376_v61 = vadd.f32 %v362_v59, %v292_v24 }
 0x128   :  { %v401_v60 = vrot.slane %v400_v55, 4  ;;  %v383_v52 = vsel %vm379_vm0, %v375_v57, %v711_v35 }
 0x129   :  { %v386_v63 = vadd.f32 %v383_v52, %v372_v26  ;;  %v384_v58 = vsel %vm379_vm0, %v376_v61, %v714_v41 }
 0x12a   :  { %v402_v0 = vadd.f32 %v401_v60, %v400_v55  ;;  %v393_v2 = vadd.f32 %v384_v58, %v373_v62 }
 0x12b   :  { %v387_v1 = vrot.slane %v386_v63, 4 }
 0x12c   :  { %v403_v3 = vrot.slane %v402_v0, 2  ;;  %v394_v6 = vrot.slane %v393_v2, 4 }
 0x12d   :  { %v388_v5 = vadd.f32 %v387_v1, %v386_v63 }
 0x12e   :  { %v404_v29 = vadd.f32 %v403_v3, %v402_v0  ;;  %v395_v9 = vadd.f32 %v394_v6, %v393_v2 }
 0x12f   :  { %v389_v8 = vrot.slane %v388_v5, 2 }
 0x130   :  { %v405_v10 = vrot.slane %v404_v29, 1  ;;  %v396_v12 = vrot.slane %v395_v9, 2 }
 0x131   :  { %v390_v11 = vadd.f32 %v389_v8, %v388_v5 }
 0x132   :  { %v406_v35 = vadd.f32 %v405_v10, %v404_v29  ;;  %v397_v14 = vadd.f32 %v396_v12, %v395_v9 }
 0x133   :  { %v391_v13 = vrot.slane %v390_v11, 1 }
 0x134   :  { %v411_v15 = vmul.f32 1.442695, %v406_v35  ;;  %v398_v17 = vrot.slane %v397_v14, 1 }
 0x135   :  { %v392_v16 = vadd.f32 %v391_v13, %v390_v11 }
 0x136   :  { %v399_v23 = vadd.f32 %v398_v17, %v397_v14  ;;  %568 = vpow2.f32 %v411_v15 }
 0x137   :  { %v407_v18 = vmul.f32 1.442695, %v392_v16 }
 0x138   :  { %v409_v41 = vmul.f32 1.442695, %v399_v23 }
 0x139   :  { %570 = vpow2.f32 %v407_v18 }
 0x13a   :  { %572 = vpow2.f32 %v409_v41 }
 0x143   :  { %v569_v22 = vpop.eup %568 }
 0x144   :  { %v430_v31 = vrot.slane %v569_v22, %v422_v25 }
 0x146   :  { %v571_v24 = vpop.eup %570 }
 0x147   :  { %v573_v27 = vpop.eup %572 }
 0x148   :  { %v416_v28 = vcombine.low %v571_v24, %v573_v27 }
 0x14a   :  { %v423_v30 = vrot.slane %v416_v28, %v422_v25 }
 0x14c   :  { %v431_v32 = vcombine.low %v423_v30, %v430_v31 }
 0x14e   :  { %v438_v33 = vrot.slane %v431_v32, %v422_v25 }
 0x150   :  { %444 = vst.msk [vmem:[#allocation7] sm:$0x7] %vm442_vm13, %v438_v33 }
 0x151   :  { %625 = shalt.err (!%p622_p0)
}
 0x152   :  { %454 = dma.vmem_to_hbm [thread:$0]  %s452_s1, 48, %s758_s2, [#allocation4]  }
 0x153   :  { %638 = dma.done.wait [#allocation4], 48  }
 0x154   :  { %639 = vsyncadd [#allocation4], 4294967248 }
 0x155   :  { %458 = vsyncpa [#allocation3], 1 }
 0x156   :  { %459 = vsyncpa [#allocation6], 1 }
 0x157   :  { %460 = vsyncpa [#allocation4], 1 }

</bundles_post_ra>
